<compile_context>
chip_gen: v7x
topology: tpu7x:2x2x1
jax: 0.10.0
libtpu: 0.0.40
codegen_flags: <defaults>
</compile_context>

<pallas_src>
import jax
import jax.numpy as jnp
from jax.experimental import pallas as pl
from jax.experimental.pallas import tpu as pltpu

NUM_SEGMENTS = 10
HIDDEN = 64
FEATURES = 1 + NUM_SEGMENTS  # 11


def _round_up(n, m):
    return ((n + m - 1) // m) * m


def avoid_mask_kernel(x_ref, m_ref, w1x_ref, w1m_ref, b1_ref, w2_ref, b2_ref,
                      w3_ref, b3_ref, o_ref):
    # x_ref:  (1, TB)            -- x column, batch on lanes
    # m_ref:  (NUM_SEGMENTS, TB) -- mask, feature-major
    # w1x: (64, 1), w1m: (64, 10), w2: (64, 64), w3: (1, 64)
    # b1/b2: (64, 1) f32; b3: (1,) in SMEM.
    # fc1 split: mask part on the MXU, x-column part on the VPU (avoids a
    # wasteful K=1 MXU push and the wrapper concat).
    h1 = jnp.dot(w1m_ref[...], m_ref[...], preferred_element_type=jnp.float32)
    h1 = h1 + w1x_ref[...] * x_ref[...] + b1_ref[...]
    h1 = jnp.maximum(h1, 0.0)                                     # relu (f32)

    h2 = jnp.dot(w2_ref[...], h1.astype(w2_ref.dtype),
                 preferred_element_type=jnp.float32) + b2_ref[...]
    h2 = jnp.maximum(h2, 0.0)                                     # relu (f32)

    out = jnp.dot(w3_ref[...], h2.astype(w3_ref.dtype),
                  preferred_element_type=jnp.float32) + b3_ref[0]
    o_ref[...] = jnp.tanh(out).astype(o_ref.dtype)                # (1, TB), lane-dense


def avoid_mask_nn(x, mask_encoding, params, *, max_tile_b=8192, use_bf16=False):
    w1, b1, w2, b2, w3, b3 = params  # PyTorch layout: W (out, in), b (out,)
    B = x.shape[0]

    x_t = x.reshape(1, B)           # free reshape: (B,1) row-major == (1,B)
    mask_t = mask_encoding.T        # (NUM_SEGMENTS, B) -- only wrapper-side copy left
    w1x = w1[:, :1]                 # (64, 1)  x-column weights (stay f32, VPU path)
    w1m = w1[:, 1:]                 # (64, 10) mask weights    (MXU path)
    b1c = b1.reshape(HIDDEN, 1)
    b2c = b2.reshape(HIDDEN, 1)
    b3s = b3.reshape(1)

    if use_bf16:
        # bf16 MXU operands, f32 accumulation / bias / relu / tanh.
        mask_t = mask_t.astype(jnp.bfloat16)
        w1m = w1m.astype(jnp.bfloat16)
        w2c = w2.astype(jnp.bfloat16)
        w3c = w3.astype(jnp.bfloat16)
    else:
        w2c, w3c = w2, w3

    tb = min(max_tile_b, _round_up(B, 128))     # lane-aligned batch tile
    grid = (pl.cdiv(B, tb),)                    # ragged last block, no pad

    w_bytes = 4 * int(w1.size + b1.size + w2.size + b2.size + w3.size + b3.size)
    cost = pl.CostEstimate(
        flops=2 * B * (FEATURES * HIDDEN + HIDDEN * HIDDEN + HIDDEN),
        transcendentals=B,
        bytes_accessed=4 * B * (FEATURES + 1) + w_bytes,
    )

    out = pl.pallas_call(
        avoid_mask_kernel,
        out_shape=jax.ShapeDtypeStruct((1, B), jnp.float32),
        grid_spec=pltpu.PrefetchScalarGridSpec(
            num_scalar_prefetch=0,
            grid=grid,
            in_specs=[
                # activations: tiled along batch (lane) axis
                pl.BlockSpec((1, tb), lambda i: (0, i)),              # x_t
                pl.BlockSpec((NUM_SEGMENTS, tb), lambda i: (0, i)),   # mask_t
                # weights/biases: constant index_map -> VMEM-resident
                pl.BlockSpec((HIDDEN, 1), lambda i: (0, 0)),          # w1x
                pl.BlockSpec((HIDDEN, NUM_SEGMENTS), lambda i: (0, 0)),  # w1m
                pl.BlockSpec((HIDDEN, 1), lambda i: (0, 0)),          # b1
                pl.BlockSpec((HIDDEN, HIDDEN), lambda i: (0, 0)),     # w2
                pl.BlockSpec((HIDDEN, 1), lambda i: (0, 0)),          # b2
                pl.BlockSpec((1, HIDDEN), lambda i: (0, 0)),          # w3
                # scalar last-layer bias lives in SMEM
                pl.BlockSpec(memory_space=pltpu.MemorySpace.SMEM),    # b3
            ],
            out_specs=pl.BlockSpec((1, tb), lambda i: (0, i)),
        ),
        compiler_params=pltpu.CompilerParams(
            dimension_semantics=("parallel",),        # megacore-shard the batch grid
            vmem_limit_bytes=32 * 1024 * 1024,
        ),
        cost_estimate=cost,
    )(x_t, mask_t, w1x, w1m, b1c, w2c, b2c, w3c, b3s)

    return out.T                                      # (B, 1)


def init_linear(key, fan_in, fan_out):
    # PyTorch nn.Linear default init: U(-1/sqrt(fan_in), 1/sqrt(fan_in)),
    # weight stored (out_features, in_features) exactly like nn.Linear.
    kw, kb = jax.random.split(key)
    bound = 1.0 / jnp.sqrt(jnp.float32(fan_in))
    w = jax.random.uniform(kw, (fan_out, fan_in), jnp.float32, -bound, bound)
    b = jax.random.uniform(kb, (fan_out,), jnp.float32, -bound, bound)
    return w, b


def reference(x, mask_encoding, params):
    w1, b1, w2, b2, w3, b3 = params
    h = jnp.concatenate([x, mask_encoding], axis=1)
    h = jax.nn.relu(h @ w1.T + b1)
    h = jax.nn.relu(h @ w2.T + b2)
    return jnp.tanh(h @ w3.T + b3)


if __name__ == "__main__":
    key = jax.random.PRNGKey(0)
    k1, k2, k3, kx, km = jax.random.split(key, 5)

    w1, b1 = init_linear(k1, FEATURES, HIDDEN)
    w2, b2 = init_linear(k2, HIDDEN, HIDDEN)
    w3, b3 = init_linear(k3, HIDDEN, 1)
    params = (w1, b1, w2, b2, w3, b3)

    # Small deterministic check (B=8) plus a ragged-block check (B=200).
    for B in (8, 200):
        kxb = jax.random.fold_in(kx, B)
        kmb = jax.random.fold_in(km, B)
        x = jax.random.normal(kxb, (B, 1), jnp.float32)
        mask_encoding = jax.random.normal(kmb, (B, NUM_SEGMENTS), jnp.float32)

        out = jax.block_until_ready(avoid_mask_nn(x, mask_encoding, params))
        ref = reference(x, mask_encoding, params)

        assert out.shape == (B, 1)
        assert jnp.allclose(out, ref, atol=1e-5, rtol=1e-5)

    print("KERNEL_OK")
</pallas_src>

<mosaic_0001>
module attributes {stable_mosaic.version = 11 : i64} {
  func.func @avoid_mask_kernel(%arg0: i32, %arg1: memref<1x128xf32, #tpu.memory_space<vmem>>, %arg2: memref<10x128xf32, #tpu.memory_space<vmem>>, %arg3: memref<64x1xf32, #tpu.memory_space<vmem>>, %arg4: memref<64x10xf32, #tpu.memory_space<vmem>>, %arg5: memref<64x1xf32, #tpu.memory_space<vmem>>, %arg6: memref<64x64xf32, #tpu.memory_space<vmem>>, %arg7: memref<64x1xf32, #tpu.memory_space<vmem>>, %arg8: memref<1x64xf32, #tpu.memory_space<vmem>>, %arg9: memref<1xf32, #tpu.memory_space<smem>>, %arg10: memref<1x128xf32, #tpu.memory_space<vmem>>) attributes {dimension_semantics = [#tpu.dimension_semantics<parallel>], iteration_bounds = array<i64: 1>, scalar_prefetch = 0 : i64, scratch_operands = 0 : i64, tpu.core_type = #tpu.core_type<tc>, window_params = [{transform_indices = @transform_0, window_bounds = array<i64: 1, 128>}, {transform_indices = @transform_1, window_bounds = array<i64: 10, 128>}, {pipeline_mode = #tpu.pipeline_mode<synchronous>, transform_indices = @transform_2, window_bounds = array<i64: 64, 1>}, {pipeline_mode = #tpu.pipeline_mode<synchronous>, transform_indices = @transform_3, window_bounds = array<i64: 64, 10>}, {pipeline_mode = #tpu.pipeline_mode<synchronous>, transform_indices = @transform_4, window_bounds = array<i64: 64, 1>}, {pipeline_mode = #tpu.pipeline_mode<synchronous>, transform_indices = @transform_5, window_bounds = array<i64: 64, 64>}, {pipeline_mode = #tpu.pipeline_mode<synchronous>, transform_indices = @transform_6, window_bounds = array<i64: 64, 1>}, {pipeline_mode = #tpu.pipeline_mode<synchronous>, transform_indices = @transform_7, window_bounds = array<i64: 1, 64>}, {transform_indices = @transform_8, window_bounds = array<i64: 1>}, {transform_indices = @transform_9, window_bounds = array<i64: 1, 128>}]} {
    %c0 = arith.constant 0 : index
    %c0_0 = arith.constant 0 : index
    %0 = vector.load %arg4[%c0, %c0_0] : memref<64x10xf32, #tpu.memory_space<vmem>>, vector<64x10xf32>
    %c0_1 = arith.constant 0 : index
    %c0_2 = arith.constant 0 : index
    %1 = vector.load %arg2[%c0_1, %c0_2] : memref<10x128xf32, #tpu.memory_space<vmem>>, vector<10x128xf32>
    %cst = arith.constant dense<0.000000e+00> : vector<64x128xf32>
    %2 = tpu.matmul %0, %1, %cst {dimension_numbers = #tpu.dot_dimension_numbers<[1], [0], [0], [1], [0, 0, 1, 1], [], []>} : vector<64x10xf32>, vector<10x128xf32>, vector<64x128xf32> -> vector<64x128xf32>
    %c0_3 = arith.constant 0 : index
    %c0_4 = arith.constant 0 : index
    %3 = vector.load %arg3[%c0_3, %c0_4] : memref<64x1xf32, #tpu.memory_space<vmem>>, vector<64x1xf32>
    %c0_5 = arith.constant 0 : index
    %c0_6 = arith.constant 0 : index
    %4 = vector.load %arg1[%c0_5, %c0_6] : memref<1x128xf32, #tpu.memory_space<vmem>>, vector<1x128xf32>
    %5 = vector.broadcast %3 : vector<64x1xf32> to vector<64x128xf32>
    %6 = vector.broadcast %4 : vector<1x128xf32> to vector<64x128xf32>
    %7 = arith.mulf %5, %6 : vector<64x128xf32>
    %8 = arith.addf %2, %7 : vector<64x128xf32>
    %c0_7 = arith.constant 0 : index
    %c0_8 = arith.constant 0 : index
    %9 = vector.load %arg5[%c0_7, %c0_8] : memref<64x1xf32, #tpu.memory_space<vmem>>, vector<64x1xf32>
    %10 = vector.broadcast %9 : vector<64x1xf32> to vector<64x128xf32>
    %11 = arith.addf %8, %10 : vector<64x128xf32>
    %cst_9 = arith.constant 0.000000e+00 : f32
    %12 = vector.broadcast %cst_9 : f32 to vector<64x128xf32>
    %13 = arith.maximumf %11, %12 : vector<64x128xf32>
    %c0_10 = arith.constant 0 : index
    %c0_11 = arith.constant 0 : index
    %14 = vector.load %arg6[%c0_10, %c0_11] : memref<64x64xf32, #tpu.memory_space<vmem>>, vector<64x64xf32>
    %cst_12 = arith.constant dense<0.000000e+00> : vector<64x128xf32>
    %15 = tpu.matmul %14, %13, %cst_12 {dimension_numbers = #tpu.dot_dimension_numbers<[1], [0], [0], [1], [0, 0, 1, 1], [], []>} : vector<64x64xf32>, vector<64x128xf32>, vector<64x128xf32> -> vector<64x128xf32>
    %c0_13 = arith.constant 0 : index
    %c0_14 = arith.constant 0 : index
    %16 = vector.load %arg7[%c0_13, %c0_14] : memref<64x1xf32, #tpu.memory_space<vmem>>, vector<64x1xf32>
    %17 = vector.broadcast %16 : vector<64x1xf32> to vector<64x128xf32>
    %18 = arith.addf %15, %17 : vector<64x128xf32>
    %cst_15 = arith.constant 0.000000e+00 : f32
    %19 = vector.broadcast %cst_15 : f32 to vector<64x128xf32>
    %20 = arith.maximumf %18, %19 : vector<64x128xf32>
    %c0_16 = arith.constant 0 : index
    %c0_17 = arith.constant 0 : index
    %21 = vector.load %arg8[%c0_16, %c0_17] : memref<1x64xf32, #tpu.memory_space<vmem>>, vector<1x64xf32>
    %cst_18 = arith.constant dense<0.000000e+00> : vector<1x128xf32>
    %22 = tpu.matmul %21, %20, %cst_18 {dimension_numbers = #tpu.dot_dimension_numbers<[1], [0], [0], [1], [0, 0, 1, 1], [], []>} : vector<1x64xf32>, vector<64x128xf32>, vector<1x128xf32> -> vector<1x128xf32>
    %c0_19 = arith.constant 0 : index
    %23 = memref.load %arg9[%c0_19] : memref<1xf32, #tpu.memory_space<smem>>
    %24 = vector.broadcast %23 : f32 to vector<1x128xf32>
    %25 = arith.addf %22, %24 : vector<1x128xf32>
    %26 = math.tanh %25 : vector<1x128xf32>
    %c0_20 = arith.constant 0 : index
    %c0_21 = arith.constant 0 : index
    %27 = vector.load %arg10[%c0_20, %c0_21] : memref<1x128xf32, #tpu.memory_space<vmem>>, vector<1x128xf32>
    tpu.vector_store %arg10[%c0_20, %c0_21], %26 {strides = array<i32>} : memref<1x128xf32, #tpu.memory_space<vmem>>, vector<1x128xf32>,
    return
  }
  func.func @transform_0(%arg0: i32) -> (i32, i32) {
    %c0_i32 = arith.constant 0 : i32
    %c0_i32_0 = arith.constant 0 : i32
    return %c0_i32, %arg0 : i32, i32
  }
  func.func @transform_1(%arg0: i32) -> (i32, i32) {
    %c0_i32 = arith.constant 0 : i32
    %c0_i32_0 = arith.constant 0 : i32
    return %c0_i32, %arg0 : i32, i32
  }
  func.func @transform_2(%arg0: i32) -> (i32, i32) {
    %c0_i32 = arith.constant 0 : i32
    %c0_i32_0 = arith.constant 0 : i32
    %c0_i32_1 = arith.constant 0 : i32
    return %c0_i32, %c0_i32_0 : i32, i32
  }
  func.func @transform_3(%arg0: i32) -> (i32, i32) {
    %c0_i32 = arith.constant 0 : i32
    %c0_i32_0 = arith.constant 0 : i32
    %c0_i32_1 = arith.constant 0 : i32
    return %c0_i32, %c0_i32_0 : i32, i32
  }
  func.func @transform_4(%arg0: i32) -> (i32, i32) {
    %c0_i32 = arith.constant 0 : i32
    %c0_i32_0 = arith.constant 0 : i32
    %c0_i32_1 = arith.constant 0 : i32
    return %c0_i32, %c0_i32_0 : i32, i32
  }
  func.func @transform_5(%arg0: i32) -> (i32, i32) {
    %c0_i32 = arith.constant 0 : i32
    %c0_i32_0 = arith.constant 0 : i32
    %c0_i32_1 = arith.constant 0 : i32
    return %c0_i32, %c0_i32_0 : i32, i32
  }
  func.func @transform_6(%arg0: i32) -> (i32, i32) {
    %c0_i32 = arith.constant 0 : i32
    %c0_i32_0 = arith.constant 0 : i32
    %c0_i32_1 = arith.constant 0 : i32
    return %c0_i32, %c0_i32_0 : i32, i32
  }
  func.func @transform_7(%arg0: i32) -> (i32, i32) {
    %c0_i32 = arith.constant 0 : i32
    %c0_i32_0 = arith.constant 0 : i32
    %c0_i32_1 = arith.constant 0 : i32
    return %c0_i32, %c0_i32_0 : i32, i32
  }
  func.func @transform_8(%arg0: i32) -> i32 {
    %c0_i32 = arith.constant 0 : i32
    %c0_i32_0 = arith.constant 0 : i32
    return %c0_i32 : i32
  }
  func.func @transform_9(%arg0: i32) -> (i32, i32) {
    %c0_i32 = arith.constant 0 : i32
    %c0_i32_0 = arith.constant 0 : i32
    return %c0_i32, %arg0 : i32, i32
  }
}

</mosaic_0001>

<bundles_post_ra>
// kernel: tpu_custom_call.1
= control target key start
LH: loop header
LB: loop body
LE: loop exit
PB: predicated region body
PF: predicated region fallthrough
CT: control target
= control target key end

     0   :  { %vm132_vm0 = vcmask 1041408   ;;  %vm776_vm1 = vmmov 1   ;;  %vm107_vm3 = vcmask 80896   ;;  %v777_v4 = vmov 0   ;;  %s996_s0 = inlined_call_operand.vmem [shape: f32[1,8], index: 0, kind: input, shape index: {}]   ;;  %s997_s1 = inlined_call_operand.vmem [shape: f32[10,8], index: 1, kind: input, shape index: {}]   ;;  %s998_s2 = inlined_call_operand.vmem [shape: f32[64,1], index: 2, kind: input, shape index: {}]   ;;  %s999_s3 = inlined_call_operand.vmem [shape: f32[64,10], index: 3, kind: input, shape index: {}]   ;;  %s1000_s4 = inlined_call_operand.vmem [shape: f32[64,1], index: 4, kind: input, shape index: {}]   ;;  %s1001_s5 = inlined_call_operand.vmem [shape: f32[64,64], index: 5, kind: input, shape index: {}]   ;;  %s1002_s6 = inlined_call_operand.vmem [shape: f32[64,1], index: 6, kind: input, shape index: {}]   ;;  %s1003_s7 = inlined_call_operand.vmem [shape: f32[1,64], index: 7, kind: input, shape index: {}]   ;;  %s1004_s8 = inlined_call_operand.<no memory space> [shape: f32[1], index: 8, kind: input, shape index: {}]   ;;  %s1005_s9 = inlined_call_operand.hbm [shape: f32[1,8], index: 9, kind: output, shape index: {}]  }
   0x1   :  { %v42_v0 = vld [vmem:[%s997_s1] sm:$0xff]  ;;  %v43_v1 = vld [vmem:[%s997_s1 + $0x8] sm:$0x3]  ;;  %vm709_vm2 = vmpackc.low %vm132_vm0, %vm776_vm1  ;;  %749 = vset.pattern.permute.xlu1 %v777_v4  ;;  %748 = vset.pattern.permute.xlu0 %v777_v4 }
   0x2   :  { %v34_v2 = vld [vmem:[%s999_s3] sm:$0xff]  ;;  %v708_v3 = vpack.c.bf16 %v43_v1, %v42_v0  ;;  %v46_v5 = vld [vmem:[%s998_s2 + $0x10] sm:$0xff]  ;;  %v35_v6 = vld [vmem:[%s999_s3 + $0x8] sm:$0xff] }
   0x3   :  { %649 = vmatprep.mubr.msk.f32.mxu0 %vm107_vm3, %v34_v2  ;;  %65 = vperm.xlu1 %749, %v46_v5   ;;  %v44_v7 = vld [vmem:[%s998_s2] sm:$0xff]  ;;  %v36_v8 = vld [vmem:[%s999_s3 + $0x10] sm:$0xff]  ;;  %v47_v9 = vld [vmem:[%s998_s2 + $0x18] sm:$0xff] }
   0x4   :  { %710 = vmatprep.subr.msk.bf16.mxu0 %vm709_vm2, %v708_v3  ;;  %55 = vperm.xlu0 %748, %v44_v7   ;;  %v45_v10 = vld [vmem:[%s998_s2 + $0x8] sm:$0xff]  ;;  %v37_v11 = vld [vmem:[%s999_s3 + $0x18] sm:$0xff]  ;;  %v38_v12 = vld [vmem:[%s999_s3 + $0x20] sm:$0xff] }
   0x5   :  { %713 = vmatpush3.bf16.msk.msra.mxu0 %vm709_vm2, %v708_v3  ;;  %v242_v13 = vld [vmem:[%s1000_s4 + $0x8] sm:$0xff]  ;;  %v241_v14 = vld [vmem:[%s1000_s4] sm:$0xff] }
   0x6   :  { %v39_v15 = vld [vmem:[%s999_s3 + $0x28] sm:$0xff] }
   0x7   :  { %70 = vperm.xlu1 %749, %v47_v9  }
   0x8   :  { %650 = vmatmul.mubr.msk.f32.vlgmr.msra.gmra.mrb[0].mxu0 %vm107_vm3, %v35_v6  ;;  %60 = vperm.xlu0 %748, %v45_v10  }
   0x9   :  { %652 = vmatprep.mubr.msk.f32.mxu0 %vm107_vm3, %v36_v8 }
   0xb   :  { %256 = vperm.xlu1 %749, %v242_v13  }
   0xc   :  { %653 = vmatmul.mubr.msk.f32.gmra.mrb[2].mxu0 %vm107_vm3, %v37_v11 }
   0xd   :  { %655 = vmatprep.mubr.msk.f32.mxu0 %vm107_vm3, %v38_v12 }
   0xe   :  { %15 = vsyncpa [#allocation4], 0  ;;  %v40_v16 = vld [vmem:[%s999_s3 + $0x30] sm:$0xff]  ;;  %251 = vperm.xlu0 %748, %v241_v14   ;;  %v49_v17 = vld [vmem:[%s998_s2 + $0x28] sm:$0xff]  ;;  %vm361_vm4 = vcmask 523264   ;;  %vm779_vm5 = vmmov 0  }
   0xf   :  { %v48_v18 = vld [vmem:[%s998_s2 + $0x20] sm:$0xff]  ;;  %v41_v19 = vld [vmem:[%s999_s3 + $0x38] sm:$0xff]  ;;  %80 = vperm.xlu1 %749, %v49_v17   ;;  %v243_v21 = vld [vmem:[%s1000_s4 + $0x10] sm:$0xff]  ;;  %s781_s23 = smov [#allocation3]  }
  0x10   :  { %656 = vmatmul.mubr.msk.f32.gmra.mrb[4].mxu0 %vm107_vm3, %v39_v15  ;;  %v244_v20 = vld [vmem:[%s1000_s4 + $0x18] sm:$0xff]  ;;  %v50_v23 = vld [vmem:[%s998_s2 + $0x30] sm:$0xff]  ;;  %v246_v24 = vld [vmem:[%s1000_s4 + $0x28] sm:$0xff]  ;;  %s583_s24 = sshll.u32 %s781_s23, 4  ;;  %s584_s24 = int_to_ptr.vmem [resolvable:$true] %s583_s24 }
  0x11   :  { %658 = vmatprep.mubr.msk.f32.mxu0 %vm107_vm3, %v40_v16  ;;  %v51_v22 = vld [vmem:[%s998_s2 + $0x38] sm:$0xff]  ;;  %v245_v25 = vld [vmem:[%s1000_s4 + $0x20] sm:$0xff]  ;;  %v247_v27 = vld [vmem:[%s1000_s4 + $0x30] sm:$0xff]  ;;  %s752_s25 = scalar_lea.vmem %s584_s24, 16  ;;  %s756_s26 = scalar_lea.vmem %s584_s24, 32 }
  0x12   :  { %75 = vperm.xlu0 %748, %v48_v18   ;;  %v248_v26 = vld [vmem:[%s1000_s4 + $0x38] sm:$0xff]  ;;  %v314_v28 = vld [vmem:[%s1002_s6 + $0x8] sm:$0xff]  ;;  %v313_v29 = vld [vmem:[%s1002_s6] sm:$0xff]  ;;  %p753_p0 = scmp.ne.s32.totalorder %s584_s24, %s752_s25  ;;  %p757_p1 = scmp.lt.s32.totalorder %s584_s24, %s584_s24 }
  0x13   :  { %266 = vperm.xlu1 %749, %v244_v20   ;;  %v316_v30 = vld [vmem:[%s1002_s6 + $0x18] sm:$0xff]  ;;  %v315_v31 = vld [vmem:[%s1002_s6 + $0x10] sm:$0xff]  ;;  %v318_v32 = vld [vmem:[%s1002_s6 + $0x28] sm:$0xff]  ;;  %p758_p2 = scmp.lt.s32.totalorder %s756_s26, %s752_s25 }
  0x14   :  { %659 = vmatmul.mubr.msk.f32.gmra.mrb[6].mxu0 %vm107_vm3, %v41_v19  ;;  %v317_v33 = vld [vmem:[%s1002_s6 + $0x20] sm:$0xff]  ;;  %v320_v34 = vld [vmem:[%s1002_s6 + $0x38] sm:$0xff]  ;;  %v319_v35 = vld [vmem:[%s1002_s6 + $0x30] sm:$0xff] }
  0x15   :  { %v305_v36 = vld [vmem:[%s1001_s5] sm:$0xff]  ;;  %p759_p3 = por %p758_p2, %p757_p1 }
  0x16   :  { %261 = vperm.xlu0 %748, %v243_v21   ;;  %677 = vmatprep.mubr.msk.f32.mxu1 %vm361_vm4, %v305_v36  ;;  %v591_v45 = vld [vmem:[%s996_s0] ss:$0 sm:$0xff]  ;;  %v308_v36 = vld [vmem:[%s1001_s5 + $0x18] sm:$0xff] }
  0x17   :  { %90 = vperm.xlu1 %749, %v51_v22   ;;  %p760_p4 = pnand %p759_p3, %p753_p0 }
  0x1a   :  { %85 = vperm.xlu0 %748, %v50_v23  }
  0x1b   :  { %276 = vperm.xlu1 %749, %v246_v24  }
  0x1e   :  { %271 = vperm.xlu0 %748, %v245_v25  }
  0x1f   :  { %286 = vperm.xlu1 %749, %v248_v26  }
  0x22   :  { %281 = vperm.xlu0 %748, %v247_v27  }
  0x23   :  { %328 = vperm.xlu1 %749, %v314_v28  }
  0x26   :  { %323 = vperm.xlu0 %748, %v313_v29  }
  0x27   :  { %338 = vperm.xlu1 %749, %v316_v30  }
  0x2a   :  { %333 = vperm.xlu0 %748, %v315_v31  }
  0x2b   :  { %348 = vperm.xlu1 %749, %v318_v32  }
  0x2e   :  { %343 = vperm.xlu0 %748, %v317_v33  }
  0x2f   :  { %358 = vperm.xlu1 %749, %v320_v34   ;;  %v306_v34 = vld [vmem:[%s1001_s5 + $0x8] sm:$0xff] }
  0x32   :  { %353 = vperm.xlu0 %748, %v319_v35   ;;  %v307_v35 = vld [vmem:[%s1001_s5 + $0x10] sm:$0xff] }
  0x82   :  { %v66_v37 = vpop.permute.xlu1 %65 }
  0x83   :  { %v56_v38 = vpop.permute.xlu0 %55  ;;  %v101_v58 = vmul.f32 %v591_v45, %v66_v37  ;;  %v309_v37 = vld [vmem:[%s1001_s5 + $0x20] sm:$0xff] }
  0x84   :  { %v99_v49 = vmul.f32 %v591_v45, %v56_v38  ;;  %v310_v38 = vld [vmem:[%s1001_s5 + $0x28] sm:$0xff] }
  0x86   :  { %v71_v39 = vpop.permute.xlu1 %70 }
  0x87   :  { %v61_v40 = vpop.permute.xlu0 %60  ;;  %v102_v55 = vmul.f32 %v591_v45, %v71_v39  ;;  %v311_v39 = vld [vmem:[%s1001_s5 + $0x30] sm:$0xff] }
  0x88   :  { %v100_v48 = vmul.f32 %v591_v45, %v61_v40  ;;  %v312_v40 = vld [vmem:[%s1001_s5 + $0x38] sm:$0xff] }
  0x8a   :  { %v257_v41 = vpop.permute.xlu1 %256 }
  0x8d   :  { %v252_v42 = vpop.permute.xlu0 %251 }
  0x8e   :  { %v81_v43 = vpop.permute.xlu1 %80 }
  0x8f   :  { %v104_v2 = vmul.f32 %v591_v45, %v81_v43 }
  0x91   :  { %v76_v44 = vpop.permute.xlu0 %75 }
  0x92   :  { %v267_v46 = vpop.permute.xlu1 %266  ;;  %v103_v4 = vmul.f32 %v591_v45, %v76_v44 }
  0x95   :  { %v262_v47 = vpop.permute.xlu0 %261 }
  0x96   :  { %v91_v53 = vpop.permute.xlu1 %90 }
  0x97   :  { %v106_v15 = vmul.f32 %v591_v45, %v91_v53 }
  0x99   :  { %v86_v56 = vpop.permute.xlu0 %85 }
  0x9a   :  { %v277_v5 = vpop.permute.xlu1 %276  ;;  %v105_v17 = vmul.f32 %v591_v45, %v86_v56 }
  0x9d   :  { %v272_v9 = vpop.permute.xlu0 %271 }
  0x9e   :  { %v287_v24 = vpop.permute.xlu1 %286 }
  0xa1   :  { %v282_v27 = vpop.permute.xlu0 %281 }
  0xa2   :  { %v329_v43 = vpop.permute.xlu1 %328 }
  0xa5   :  { %v324_v44 = vpop.permute.xlu0 %323 }
  0xa6   :  { %v339_v45 = vpop.permute.xlu1 %338 }
  0xaa   :  { %v349_v56 = vpop.permute.xlu1 %348 }
  0xdb   :  { %v651_v50 = vpop.f32.mrb[0].mxu0 }
  0xdc   :  { %v208_v51 = vadd.f32 %v651_v50, %v100_v48  ;;  %v202_v52 = vpop.f32.mrb[1].mxu0 }
  0xdd   :  { %v203_v54 = vadd.f32 %v202_v52, %v99_v49 }
  0xde   :  { %v290_v57 = vadd.f32 %v257_v41, %v208_v51  ;;  %v778_v41 = vmov 0.0|0.0  }
  0xdf   :  { %v289_v59 = vadd.f32 %v252_v42, %v203_v54  ;;  %v654_v60 = vpop.f32.mrb[2].mxu0  ;;  %730 = vmatprep.subr.bf16.mxu0 %v778_v41  ;;  %v780_v42 = vmov 0.0  }
  0xe0   :  { %v298_v61 = vmax.f32 %v290_v57, 0.0  ;;  %v218_v62 = vadd.f32 %v654_v60, %v102_v55  ;;  %v212_v63 = vpop.f32.mrb[3].mxu0  ;;  %705 = vmatprep.mubr.msk.f32.mxu0 %vm779_vm5, %v780_v42 }
  0xe1   :  { %v297_v0 = vmax.f32 %v289_v59, 0.0  ;;  %v213_v1 = vadd.f32 %v212_v63, %v101_v58 }
  0xe2   :  { %v292_v3 = vadd.f32 %v267_v46, %v218_v62 }
  0xe3   :  { %v291_v6 = vadd.f32 %v262_v47, %v213_v1  ;;  %v657_v7 = vpop.f32.mrb[4].mxu0  ;;  %v714_v8 = vpack.c.bf16 %v298_v61, %v297_v0  ;;  %v334_v47 = vpop.permute.xlu0 %333 }
  0xe4   :  { %v300_v10 = vmax.f32 %v292_v3, 0.0  ;;  %v228_v11 = vadd.f32 %v657_v7, %v104_v2  ;;  %v222_v12 = vpop.f32.mrb[5].mxu0 }
  0xe5   :  { %v299_v13 = vmax.f32 %v291_v6, 0.0  ;;  %v223_v14 = vadd.f32 %v222_v12, %v103_v4  ;;  %715 = vmatprep.subr.bf16.mxu1 %v714_v8  ;;  %v359_v4 = vpop.permute.xlu1 %358 }
  0xe6   :  { %v294_v16 = vadd.f32 %v277_v5, %v228_v11  ;;  %717 = vmatpush3.bf16.msra.mxu1 %v714_v8 }
  0xe7   :  { %v293_v18 = vadd.f32 %v272_v9, %v223_v14  ;;  %v660_v19 = vpop.f32.mrb[6].mxu0  ;;  %v718_v20 = vpack.c.bf16 %v300_v10, %v299_v13  ;;  %v344_v59 = vpop.permute.xlu0 %343 }
  0xe8   :  { %v302_v21 = vmax.f32 %v294_v16, 0.0  ;;  %v238_v22 = vadd.f32 %v660_v19, %v106_v15  ;;  %v232_v23 = vpop.f32.mrb[7].mxu0  ;;  %v499_v15 = vld [vmem:[%s1003_s7] sm:$0x1]  ;;  %v501_v16 = vstv %s1004_s8 }
  0xe9   :  { %v301_v25 = vmax.f32 %v293_v18, 0.0  ;;  %v233_v26 = vadd.f32 %v232_v23, %v105_v17  ;;  %719 = vmatprep.subr.bf16.mxu1 %v718_v20 }
  0xea   :  { %v296_v28 = vadd.f32 %v287_v24, %v238_v22  ;;  %721 = vmatpush3.bf16.msra.mxu1 %v718_v20 }
  0xeb   :  { %v295_v29 = vadd.f32 %v282_v27, %v233_v26  ;;  %v722_v30 = vpack.c.bf16 %v302_v21, %v301_v25  ;;  %v354_v7 = vpop.permute.xlu0 %353 }
  0xec   :  { %v304_v31 = vmax.f32 %v296_v28, 0.0 }
  0xed   :  { %v303_v32 = vmax.f32 %v295_v29, 0.0  ;;  %723 = vmatprep.subr.bf16.mxu1 %v722_v30 }
  0xee   :  { %725 = vmatpush3.bf16.msra.mxu1 %v722_v30 }
  0xef   :  { %v726_v33 = vpack.c.bf16 %v304_v31, %v303_v32 }
  0xf1   :  { %727 = vmatprep.subr.bf16.mxu1 %v726_v33 }
  0xf2   :  { %729 = vmatpush3.bf16.msra.mxu1 %v726_v33 }
  0xf5   :  { %678 = vmatmul.mubr.msk.f32.vlgmr.msra.gmra.mrb[0].mxu1 %vm361_vm4, %v306_v34 }
  0xf6   :  { %680 = vmatprep.mubr.msk.f32.mxu1 %vm361_vm4, %v307_v35 }
  0xf9   :  { %681 = vmatmul.mubr.msk.f32.gmra.mrb[2].mxu1 %vm361_vm4, %v308_v36 }
  0xfa   :  { %683 = vmatprep.mubr.msk.f32.mxu1 %vm361_vm4, %v309_v37 }
  0xfd   :  { %684 = vmatmul.mubr.msk.f32.gmra.mrb[4].mxu1 %vm361_vm4, %v310_v38 }
  0xfe   :  { %686 = vmatprep.mubr.msk.f32.mxu1 %vm361_vm4, %v311_v39 }
 0x101   :  { %687 = vmatmul.mubr.msk.f32.gmra.mrb[6].mxu1 %vm361_vm4, %v312_v40 }
 0x1c8   :  { %v679_v46 = vpop.f32.mrb[0].mxu1 }
 0x1c9   :  { %v458_v48 = vadd.f32 %v679_v46, %v329_v43  ;;  %v452_v49 = vpop.f32.mrb[1].mxu1 }
 0x1ca   :  { %v453_v50 = vadd.f32 %v452_v49, %v324_v44 }
 0x1cb   :  { %v492_v51 = vmax.f32 %v458_v48, 0.0 }
 0x1cc   :  { %v491_v52 = vmax.f32 %v453_v50, 0.0  ;;  %v682_v53 = vpop.f32.mrb[2].mxu1 }
 0x1cd   :  { %v468_v54 = vadd.f32 %v682_v53, %v339_v45  ;;  %v462_v55 = vpop.f32.mrb[3].mxu1 }
 0x1ce   :  { %v731_v57 = vpack.c.bf16 %v492_v51, %v491_v52  ;;  %v463_v58 = vadd.f32 %v462_v55, %v334_v47 }
 0x1cf   :  { %v494_v60 = vmax.f32 %v468_v54, 0.0 }
 0x1d0   :  { %v493_v61 = vmax.f32 %v463_v58, 0.0  ;;  %v685_v62 = vpop.f32.mrb[4].mxu1  ;;  %732 = vmatpush3.bf16.msra.mxu0 %v731_v57 }
 0x1d1   :  { %v478_v63 = vadd.f32 %v685_v62, %v349_v56  ;;  %v472_v0 = vpop.f32.mrb[5].mxu1  ;;  %733 = vmatprep.subr.bf16.mxu0 %v778_v41 }
 0x1d2   :  { %v734_v1 = vpack.c.bf16 %v494_v60, %v493_v61  ;;  %v473_v2 = vadd.f32 %v472_v0, %v344_v59 }
 0x1d3   :  { %v496_v3 = vmax.f32 %v478_v63, 0.0 }
 0x1d4   :  { %v495_v5 = vmax.f32 %v473_v2, 0.0  ;;  %v688_v6 = vpop.f32.mrb[6].mxu1  ;;  %735 = vmatpush3.bf16.msra.mxu0 %v734_v1 }
 0x1d5   :  { %v488_v8 = vadd.f32 %v688_v6, %v359_v4  ;;  %v482_v9 = vpop.f32.mrb[7].mxu1  ;;  %736 = vmatprep.subr.bf16.mxu0 %v778_v41 }
 0x1d6   :  { %v737_v10 = vpack.c.bf16 %v496_v3, %v495_v5  ;;  %v483_v11 = vadd.f32 %v482_v9, %v354_v7 }
 0x1d7   :  { %v498_v12 = vmax.f32 %v488_v8, 0.0 }
 0x1d8   :  { %v497_v13 = vmax.f32 %v483_v11, 0.0  ;;  %738 = vmatpush3.bf16.msra.mxu0 %v737_v10 }
 0x1d9   :  { %739 = vmatprep.subr.bf16.mxu0 %v778_v41 }
 0x1da   :  { %v740_v14 = vpack.c.bf16 %v498_v12, %v497_v13 }
 0x1dc   :  { %741 = vmatpush3.bf16.msra.mxu0 %v740_v14 }
 0x1df   :  { %706 = vmatmul.mubr.msk.f32.vlgmr.msra.gmra.mrb[8].mxu0 %vm361_vm4, %v499_v15 }
 0x2b2   :  { %v571_v17 = vpop.f32.mrb[8].mxu0 }
 0x2b3   :  { %v572_v18 = vadd.f32 %v571_v17, %v501_v16  ;;  %v707_v19 = vpop.f32.mrb[9].mxu0 }
 0x2b5   :  { %750 = vtanh.f32 %v572_v18 }
 0x2bf   :  { %v751_v20 = vpop.eup %750 }
 0x2c0   :  { %576 = vst [vmem:[#allocation3] sm:$0x1] %v751_v20 }
 0x2c1   :  { %763 = shalt.err (!%p760_p4)
}
 0x2c2   :  { %s764_s8 = scalar_lea.hbm %s1005_s9, 16 }
 0x2c3   :  { %p765_p5 = scmp.ne.s32.totalorder %s1005_s9, %s764_s8  ;;  %p768_p6 = scmp.lt.u32.totalorder %s764_s8, %s1005_s9 }
 0x2c5   :  { %p770_p7 = pnand %p768_p6, %p765_p5 }
 0x2c7   :  { %773 = shalt.err (!%p770_p7)
}
 0x2c8   :  { %586 = dma.vmem_to_hbm [thread:$0]  %s584_s24, 16, %s1005_s9, [#allocation4]  }
 0x2c9   :  { %774 = dma.done.wait [#allocation4], 16  }
 0x2ca   :  { %775 = vsyncadd [#allocation4], 4294967280 }
 0x2cb   :  { %590 = vsyncpa [#allocation4], 1 }

</bundles_post_ra>
